<compile_context>
chip_gen: v5e
topology: v5e:2x2
jax: 0.10.0
libtpu: 0.0.40
codegen_flags: <defaults>
</compile_context>

<pallas_src>
import functools
import math

import numpy as np
import jax
import jax.numpy as jnp
from jax.experimental import pallas as pl
from jax.experimental.pallas import tpu as pltpu


def _round_up(x, m):
    return (x + m - 1) // m * m


# --------------------------------------------------------------------------- #
# Kernels
# --------------------------------------------------------------------------- #

def _ffn_kernel_resident(x_ref, w1_ref, b1_ref, w2_ref, b2_ref, o_ref):
    """linear1 -> ReLU -> linear2 with fully-resident (single-H-tile) weights."""
    h = jnp.dot(x_ref[...], w1_ref[...], preferred_element_type=jnp.float32)
    h = jnp.maximum(h + b1_ref[...], 0.0)            # f32 bias+ReLU (v5e-safe)
    y = jnp.dot(h.astype(w2_ref.dtype), w2_ref[...],
                preferred_element_type=jnp.float32)
    o_ref[...] = (y + b2_ref[...]).astype(o_ref.dtype)


def _ffn_kernel_htiled(x_ref, w1_ref, b1_ref, w2_ref, b2_ref, o_ref, acc_ref):
    """Hidden dim tiled: linear2 partials accumulate in an f32 VMEM scratch."""
    hi = pl.program_id(1)

    @pl.when(hi == 0)
    def _():
        acc_ref[...] = jnp.zeros_like(acc_ref)

    h = jnp.dot(x_ref[...], w1_ref[...], preferred_element_type=jnp.float32)
    h = jnp.maximum(h + b1_ref[...], 0.0)
    acc_ref[...] += jnp.dot(h.astype(w2_ref.dtype), w2_ref[...],
                            preferred_element_type=jnp.float32)

    @pl.when(hi == pl.num_programs(1) - 1)
    def _():
        o_ref[...] = (acc_ref[...] + b2_ref[...]).astype(o_ref.dtype)


# --------------------------------------------------------------------------- #
# VMEM footprint model (used for tile selection and vmem_limit_bytes)
# --------------------------------------------------------------------------- #

def _vmem_footprint(tm, th, n_h, d_pad, cbytes, obytes):
    wbuf = 1 if n_h == 1 else 2              # Buffered(1) when weights are resident
    x_b = 2 * tm * d_pad * cbytes            # double-buffered input row tile
    o_b = 2 * tm * d_pad * obytes            # double-buffered output row tile
    w1_b = wbuf * d_pad * th * cbytes
    w2_b = wbuf * th * d_pad * cbytes
    b1_b = wbuf * 8 * th * 4                 # (1, th) sublane-pads to 8 rows
    b2_b = 8 * d_pad * 4
    acc_b = tm * d_pad * 4 if n_h > 1 else 0
    return x_b + o_b + w1_b + w2_b + b1_b + b2_b + acc_b


# --------------------------------------------------------------------------- #
# Per-call jitted forward (weights are already padded/cast)
# --------------------------------------------------------------------------- #

@functools.partial(
    jax.jit,
    static_argnames=("tm", "th", "compute_dtype", "out_dtype", "vmem_limit"))
def _ffn_forward(x, w1_p, b1_p, w2_p, b2_p, *, tm, th, compute_dtype, out_dtype,
                 vmem_limit):
    lead = x.shape[:-1]
    d = x.shape[-1]
    d_pad, h_pad = w1_p.shape
    m = 1
    for s in lead:
        m *= s
    m = max(m, 1)
    m_pad = _round_up(m, tm)
    n_m = m_pad // tm
    n_h = h_pad // th

    x2 = x.reshape(m, d)
    if x2.dtype != compute_dtype:
        x2 = x2.astype(compute_dtype)
    padded = (m_pad != m) or (d_pad != d)
    if padded:
        x2 = jnp.zeros((m_pad, d_pad), compute_dtype).at[:m, :d].set(x2)

    if n_h == 1:
        # Weights / biases never change across the grid -> single-buffer them.
        resident = pl.Buffered(1)
        kernel = _ffn_kernel_resident
        grid = (n_m,)
        in_specs = [
            pl.BlockSpec((tm, d_pad), lambda i: (i, 0)),
            pl.BlockSpec((d_pad, h_pad), lambda i: (0, 0), pipeline_mode=resident),
            pl.BlockSpec((1, h_pad), lambda i: (0, 0), pipeline_mode=resident),
            pl.BlockSpec((h_pad, d_pad), lambda i: (0, 0), pipeline_mode=resident),
            pl.BlockSpec((1, d_pad), lambda i: (0, 0), pipeline_mode=resident),
        ]
        out_specs = pl.BlockSpec((tm, d_pad), lambda i: (i, 0))
        scratch_shapes = []
        dims = ("parallel",)
    else:
        kernel = _ffn_kernel_htiled
        grid = (n_m, n_h)
        in_specs = [
            pl.BlockSpec((tm, d_pad), lambda i, h: (i, 0)),
            pl.BlockSpec((d_pad, th), lambda i, h: (0, h)),
            pl.BlockSpec((1, th), lambda i, h: (0, h)),
            pl.BlockSpec((th, d_pad), lambda i, h: (h, 0)),
            pl.BlockSpec((1, d_pad), lambda i, h: (0, 0),
                         pipeline_mode=pl.Buffered(1)),
        ]
        out_specs = pl.BlockSpec((tm, d_pad), lambda i, h: (i, 0))
        scratch_shapes = [pltpu.VMEM((tm, d_pad), jnp.float32)]
        dims = ("parallel", "arbitrary")

    out2 = pl.pallas_call(
        kernel,
        out_shape=jax.ShapeDtypeStruct((m_pad, d_pad), out_dtype),
        grid_spec=pltpu.PrefetchScalarGridSpec(
            num_scalar_prefetch=0,
            grid=grid,
            in_specs=in_specs,
            out_specs=out_specs,
            scratch_shapes=scratch_shapes,
        ),
        compiler_params=pltpu.CompilerParams(
            dimension_semantics=dims,
            vmem_limit_bytes=vmem_limit,
        ),
    )(x2, w1_p, b1_p, w2_p, b2_p)

    if padded:
        out2 = out2[:m, :d]
    return out2.reshape(*lead, d)


# --------------------------------------------------------------------------- #
# Module wrapper: one-time weight prep + per-call tile selection
# --------------------------------------------------------------------------- #

class PositionwiseFeedForwardNet:
    """Inference-mode Transformer FFN: linear2(dropout(relu(linear1(x)))).

    Weights are given in nn.Linear layout (out_features, in_features) and are
    transposed / cast / zero-padded ONCE at construction (never per call).
    Dropout is the eval-mode identity.  bf16 MXU inputs by default; bias add,
    ReLU and accumulation stay f32.
    """

    _TM_MIN = 16   # multiple of 16 -> valid bf16 sublane tile, future-proof

    def __init__(self, w1, b1, w2, b2, *, compute_dtype=jnp.bfloat16,
                 out_dtype=None, tm_max=512):
        w1 = jnp.asarray(w1)
        b1 = jnp.asarray(b1)
        w2 = jnp.asarray(w2)
        b2 = jnp.asarray(b2)
        h_dim, d_dim = w1.shape
        assert w2.shape == (d_dim, h_dim)
        assert b1.shape == (h_dim,) and b2.shape == (d_dim,)

        self.D, self.H = d_dim, h_dim
        self.compute_dtype = compute_dtype
        self.out_dtype = out_dtype
        self.tm_max = max(self._TM_MIN, _round_up(tm_max, 16))

        # Generation-specific VMEM capacity (fallback: v7x's 64 MiB per core).
        try:
            self.vmem_cap = int(pltpu.get_tpu_info().vmem_capacity_bytes)
        except Exception:
            self.vmem_cap = 64 * 1024 * 1024
        self.vmem_budget = int(0.8 * self.vmem_cap)

        cbytes = np.dtype(compute_dtype).itemsize
        d_pad = _round_up(d_dim, 128)
        h_full = _round_up(h_dim, 128)

        # Hidden-dim tile: keep W1/W2 fully resident if the budget allows
        # (weights DMA'd once for the whole grid); otherwise H-tile.
        th = None
        candidates = [h_full] + [t for t in (8192, 4096, 2048, 1024, 512, 256, 128)
                                 if t < h_full]
        for cand in candidates:
            h_pad = _round_up(h_dim, cand)
            n_h = h_pad // cand
            if _vmem_footprint(self.tm_max, cand, n_h, d_pad, cbytes, 4) \
                    <= self.vmem_budget:
                th = cand
                break
        if th is None:
            # TODO(synk): add a D-tiling axis if even th=128 overflows VMEM.
            th = 128
        h_pad = _round_up(h_dim, th)
        self.D_pad, self.H_pad, self.th = d_pad, h_pad, th

        # One-time weight prep (hoisted out of the per-call path).
        w1_t = w1.T.astype(compute_dtype)                       # (D, H)
        w2_t = w2.T.astype(compute_dtype)                       # (H, D)
        b1_f = b1.astype(jnp.float32).reshape(1, h_dim)
        b2_f = b2.astype(jnp.float32).reshape(1, d_dim)
        if d_pad != d_dim or h_pad != h_dim:
            w1_t = jnp.zeros((d_pad, h_pad), compute_dtype).at[:d_dim, :h_dim].set(w1_t)
            w2_t = jnp.zeros((h_pad, d_pad), compute_dtype).at[:h_dim, :d_dim].set(w2_t)
            b1_f = jnp.zeros((1, h_pad), jnp.float32).at[:, :h_dim].set(b1_f)
            b2_f = jnp.zeros((1, d_pad), jnp.float32).at[:, :d_dim].set(b2_f)
        self.w1_p = jax.block_until_ready(w1_t)
        self.w2_p = jax.block_until_ready(w2_t)
        self.b1_p = jax.block_until_ready(b1_f)
        self.b2_p = jax.block_until_ready(b2_f)

    def __call__(self, x):
        assert x.shape[-1] == self.D
        lead = x.shape[:-1]
        m = int(math.prod(lead)) if lead else 1
        out_dtype = np.dtype(self.out_dtype if self.out_dtype is not None
                             else x.dtype)

        cbytes = np.dtype(self.compute_dtype).itemsize
        obytes = out_dtype.itemsize
        n_h = self.H_pad // self.th

        # Row tile: multiple of 16, as large as the budget + row count allow.
        m16 = max(self._TM_MIN, _round_up(m, 16))
        tm = min(self.tm_max, m16)
        while tm > self._TM_MIN and _vmem_footprint(
                tm, self.th, n_h, self.D_pad, cbytes, obytes) > self.vmem_budget:
            tm = max(self._TM_MIN, _round_up(tm // 2, 16))
        # Prefer >= 2 row tiles so the "parallel" axis can split across the two
        # v7x TensorCores (a one-step grid leaves a core idle).
        if tm >= m16 and m16 >= 2 * self._TM_MIN:
            tm = _round_up(m16 // 2, 16)

        fp = _vmem_footprint(tm, self.th, n_h, self.D_pad, cbytes, obytes)
        vmem_limit = int(min(0.9 * self.vmem_cap,
                             max(32 * 1024 * 1024, fp + (8 << 20))))

        return _ffn_forward(
            x, self.w1_p, self.b1_p, self.w2_p, self.b2_p,
            tm=int(tm), th=int(self.th),
            compute_dtype=self.compute_dtype, out_dtype=out_dtype,
            vmem_limit=vmem_limit)


def _reference_ffn(x, w1, b1, w2, b2):
    """Pure-JAX reference with nn.Linear weight layout (out, in)."""
    h = jnp.maximum(x @ w1.T + b1, 0.0)
    return h @ w2.T + b2


if __name__ == "__main__":
    # Module config: model_dimension=32, width_mult=4 -> hidden=128 (eval mode).
    B, S, D = 2, 8, 32
    H = 4 * D

    key = jax.random.PRNGKey(0)
    kx, kw1, kb1, kw2, kb2 = jax.random.split(key, 5)

    x = jax.random.normal(kx, (B, S, D), dtype=jnp.float32)
    # nn.Linear layout: weight is (out_features, in_features).
    w1 = jax.random.normal(kw1, (H, D), dtype=jnp.float32) / jnp.sqrt(D)
    b1 = jax.random.normal(kb1, (H,), dtype=jnp.float32) * 0.01
    w2 = jax.random.normal(kw2, (D, H), dtype=jnp.float32) / jnp.sqrt(H)
    b2 = jax.random.normal(kb2, (D,), dtype=jnp.float32) * 0.01

    ref = _reference_ffn(x, w1, b1, w2, b2)

    # f32 MXU path: exact check against the reference.
    ffn_f32 = PositionwiseFeedForwardNet(w1, b1, w2, b2,
                                         compute_dtype=jnp.float32)
    out_f32 = jax.block_until_ready(ffn_f32(x))
    assert out_f32.shape == (B, S, D)
    assert jnp.allclose(out_f32, ref, atol=1e-5, rtol=1e-5), "f32 mismatch"

    # bf16 MXU path (default / throughput path): looser tolerance — accuracy is
    # bounded by rounding x, W1, W2 to bf16 before the MXU.
    ffn_bf16 = PositionwiseFeedForwardNet(w1, b1, w2, b2,
                                          compute_dtype=jnp.bfloat16)
    out_bf16 = jax.block_until_ready(ffn_bf16(x))
    assert out_bf16.shape == (B, S, D)
    assert jnp.allclose(out_bf16, ref, atol=3e-2, rtol=3e-2), "bf16 mismatch"

    print("KERNEL_OK")
</pallas_src>

<mosaic_0001>
module attributes {stable_mosaic.version = 11 : i64} {
  func.func @_ffn_kernel_resident(%arg0: i32, %arg1: memref<16x128xf32, #tpu.memory_space<vmem>>, %arg2: memref<128x128xf32, #tpu.memory_space<vmem>>, %arg3: memref<1x128xf32, #tpu.memory_space<vmem>>, %arg4: memref<128x128xf32, #tpu.memory_space<vmem>>, %arg5: memref<1x128xf32, #tpu.memory_space<vmem>>, %arg6: memref<16x128xf32, #tpu.memory_space<vmem>>) attributes {dimension_semantics = [#tpu.dimension_semantics<parallel>], iteration_bounds = array<i64: 1>, scalar_prefetch = 0 : i64, scratch_operands = 0 : i64, tpu.core_type = #tpu.core_type<tc>, window_params = [{transform_indices = @transform_0, window_bounds = array<i64: 16, 128>}, {pipeline_mode = #tpu.pipeline_mode<synchronous>, transform_indices = @transform_1, window_bounds = array<i64: 128, 128>}, {pipeline_mode = #tpu.pipeline_mode<synchronous>, transform_indices = @transform_2, window_bounds = array<i64: 1, 128>}, {pipeline_mode = #tpu.pipeline_mode<synchronous>, transform_indices = @transform_3, window_bounds = array<i64: 128, 128>}, {pipeline_mode = #tpu.pipeline_mode<synchronous>, transform_indices = @transform_4, window_bounds = array<i64: 1, 128>}, {transform_indices = @transform_5, window_bounds = array<i64: 16, 128>}]} {
    %c0 = arith.constant 0 : index
    %c0_0 = arith.constant 0 : index
    %0 = vector.load %arg1[%c0, %c0_0] : memref<16x128xf32, #tpu.memory_space<vmem>>, vector<16x128xf32>
    %c0_1 = arith.constant 0 : index
    %c0_2 = arith.constant 0 : index
    %1 = vector.load %arg2[%c0_1, %c0_2] : memref<128x128xf32, #tpu.memory_space<vmem>>, vector<128x128xf32>
    %cst = arith.constant dense<0.000000e+00> : vector<16x128xf32>
    %2 = tpu.matmul %0, %1, %cst {dimension_numbers = #tpu.dot_dimension_numbers<[1], [0], [0], [1], [0, 0, 1, 1], [], []>} : vector<16x128xf32>, vector<128x128xf32>, vector<16x128xf32> -> vector<16x128xf32>
    %c0_3 = arith.constant 0 : index
    %c0_4 = arith.constant 0 : index
    %3 = vector.load %arg3[%c0_3, %c0_4] : memref<1x128xf32, #tpu.memory_space<vmem>>, vector<1x128xf32>
    %4 = vector.broadcast %3 : vector<1x128xf32> to vector<16x128xf32>
    %5 = arith.addf %2, %4 : vector<16x128xf32>
    %cst_5 = arith.constant 0.000000e+00 : f32
    %6 = vector.broadcast %cst_5 : f32 to vector<16x128xf32>
    %7 = arith.maximumf %5, %6 : vector<16x128xf32>
    %c0_6 = arith.constant 0 : index
    %c0_7 = arith.constant 0 : index
    %8 = vector.load %arg4[%c0_6, %c0_7] : memref<128x128xf32, #tpu.memory_space<vmem>>, vector<128x128xf32>
    %cst_8 = arith.constant dense<0.000000e+00> : vector<16x128xf32>
    %9 = tpu.matmul %7, %8, %cst_8 {dimension_numbers = #tpu.dot_dimension_numbers<[1], [0], [0], [1], [0, 0, 1, 1], [], []>} : vector<16x128xf32>, vector<128x128xf32>, vector<16x128xf32> -> vector<16x128xf32>
    %c0_9 = arith.constant 0 : index
    %c0_10 = arith.constant 0 : index
    %10 = vector.load %arg5[%c0_9, %c0_10] : memref<1x128xf32, #tpu.memory_space<vmem>>, vector<1x128xf32>
    %11 = vector.broadcast %10 : vector<1x128xf32> to vector<16x128xf32>
    %12 = arith.addf %9, %11 : vector<16x128xf32>
    %c0_11 = arith.constant 0 : index
    %c0_12 = arith.constant 0 : index
    %13 = vector.load %arg6[%c0_11, %c0_12] : memref<16x128xf32, #tpu.memory_space<vmem>>, vector<16x128xf32>
    tpu.vector_store %arg6[%c0_11, %c0_12], %12 {strides = array<i32>} : memref<16x128xf32, #tpu.memory_space<vmem>>, vector<16x128xf32>,
    return
  }
  func.func @transform_0(%arg0: i32) -> (i32, i32) {
    %c0_i32 = arith.constant 0 : i32
    %c0_i32_0 = arith.constant 0 : i32
    return %arg0, %c0_i32 : i32, i32
  }
  func.func @transform_1(%arg0: i32) -> (i32, i32) {
    %c0_i32 = arith.constant 0 : i32
    %c0_i32_0 = arith.constant 0 : i32
    %c0_i32_1 = arith.constant 0 : i32
    return %c0_i32, %c0_i32_0 : i32, i32
  }
  func.func @transform_2(%arg0: i32) -> (i32, i32) {
    %c0_i32 = arith.constant 0 : i32
    %c0_i32_0 = arith.constant 0 : i32
    %c0_i32_1 = arith.constant 0 : i32
    return %c0_i32, %c0_i32_0 : i32, i32
  }
  func.func @transform_3(%arg0: i32) -> (i32, i32) {
    %c0_i32 = arith.constant 0 : i32
    %c0_i32_0 = arith.constant 0 : i32
    %c0_i32_1 = arith.constant 0 : i32
    return %c0_i32, %c0_i32_0 : i32, i32
  }
  func.func @transform_4(%arg0: i32) -> (i32, i32) {
    %c0_i32 = arith.constant 0 : i32
    %c0_i32_0 = arith.constant 0 : i32
    %c0_i32_1 = arith.constant 0 : i32
    return %c0_i32, %c0_i32_0 : i32, i32
  }
  func.func @transform_5(%arg0: i32) -> (i32, i32) {
    %c0_i32 = arith.constant 0 : i32
    %c0_i32_0 = arith.constant 0 : i32
    return %arg0, %c0_i32 : i32, i32
  }
}

</mosaic_0001>

<bundles_post_ra>
// kernel: _ffn_forward.1
= control target key start
LH: loop header
LB: loop body
LE: loop exit
PB: predicated region body
PF: predicated region fallthrough
CT: control target
= control target key end

     0   :  { %10 = vsyncpa [#allocation3], 0  ;;  %s298_s0 = inlined_call_operand.vmem [shape: f32[16,128], index: 0, kind: input, shape index: {}]   ;;  %s299_s1 = inlined_call_operand.hbm [shape: f32[128,128], index: 1, kind: input, shape index: {}]   ;;  %s300_s2 = inlined_call_operand.vmem [shape: f32[1,128], index: 2, kind: input, shape index: {}]   ;;  %s301_s3 = inlined_call_operand.hbm [shape: f32[128,128], index: 3, kind: input, shape index: {}]   ;;  %s302_s4 = inlined_call_operand.vmem [shape: f32[1,128], index: 4, kind: input, shape index: {}]   ;;  %s303_s5 = inlined_call_operand.vmem [shape: f32[16,128], index: 5, kind: output, shape index: {}]  }
   0x1   :  { %s18_s20 = sshll.u32 %s299_s1, 4  ;;  %s19_s20 = int_to_ptr.hbm [resolvable:$true] %s18_s20 }
   0x2   :  { %11 = vsyncpa [#allocation5], 0  ;;  %s240_s21 = smov [#allocation2]   ;;  %s33_s25 = sshll.u32 %s301_s3, 4  ;;  %s34_s25 = int_to_ptr.hbm [resolvable:$true] %s33_s25 }
   0x3   :  { %s20_s22 = sshll.u32 %s240_s21, 4  ;;  %s241_s26 = smov 128   ;;  %s21_s22 = int_to_ptr.vmem [resolvable:$true] %s20_s22 }
   0x4   :  { %s242_s27 = smov 8   ;;  %s243_s28 = smov [#allocation4]  }
   0x5   :  { %26 = dma.hbm_to_vmem [thread:$0]  %s19_s20, 2048, %s21_s22, [#allocation3], %s241_s26, %s241_s26, %s242_s27  }
   0x6   :  { %s35_s29 = sshll.u32 %s243_s28, 4  ;;  %s36_s29 = int_to_ptr.vmem [resolvable:$true] %s35_s29 }
   0x7   :  { %41 = dma.hbm_to_vmem [thread:$0]  %s34_s25, 2048, %s36_s29, [#allocation5], %s241_s26, %s241_s26, %s242_s27  }
   0x8   :  { %236 = dma.done.wait [#allocation3], 2048  }
   0x9   :  { %237 = vsyncadd [#allocation3], 4294965248 }
   0xa   :  { %238 = dma.done.wait [#allocation5], 2048  }
   0xb   :  { %239 = vsyncadd [#allocation5], 4294965248  ;;  %v69_v0 = vld [vmem:[#allocation2 + $0x78] sm:$0xff]  ;;  %v68_v1 = vld [vmem:[#allocation2 + $0x70] sm:$0xff] }
   0xc   :  { %150 = vmatpush.msra.mxu2 %v69_v0  ;;  %74 = vmatpush.msra.mxu0 %v69_v0  ;;  %v67_v2 = vld [vmem:[#allocation2 + $0x68] sm:$0xff]  ;;  %v66_v3 = vld [vmem:[#allocation2 + $0x60] sm:$0xff]  ;;  %v65_v4 = vld [vmem:[#allocation2 + $0x58] sm:$0xff] }
   0xd   :  { %v114_v5 = vld [vmem:[#allocation4 + $0x78] sm:$0xff]  ;;  %v113_v6 = vld [vmem:[#allocation4 + $0x70] sm:$0xff]  ;;  %v112_v8 = vld [vmem:[#allocation4 + $0x68] sm:$0xff] }
   0xe   :  { %151 = vmatpush.msra.mxu2 %v68_v1  ;;  %75 = vmatpush.msra.mxu0 %v68_v1  ;;  %v64_v7 = vld [vmem:[#allocation2 + $0x50] sm:$0xff]  ;;  %v63_v9 = vld [vmem:[#allocation2 + $0x48] sm:$0xff]  ;;  %v111_v10 = vld [vmem:[#allocation4 + $0x60] sm:$0xff] }
   0xf   :  { %166 = vmatpush.msra.mxu3 %v114_v5  ;;  %119 = vmatpush.msra.mxu1 %v114_v5  ;;  %v62_v11 = vld [vmem:[#allocation2 + $0x40] sm:$0xff]  ;;  %v110_v12 = vld [vmem:[#allocation4 + $0x58] sm:$0xff]  ;;  %v109_v14 = vld [vmem:[#allocation4 + $0x50] sm:$0xff] }
  0x10   :  { %152 = vmatpush.msra.mxu2 %v67_v2  ;;  %76 = vmatpush.msra.mxu0 %v67_v2  ;;  %v61_v13 = vld [vmem:[#allocation2 + $0x38] sm:$0xff]  ;;  %v60_v15 = vld [vmem:[#allocation2 + $0x30] sm:$0xff]  ;;  %v108_v16 = vld [vmem:[#allocation4 + $0x48] sm:$0xff] }
  0x11   :  { %167 = vmatpush.msra.mxu3 %v113_v6  ;;  %120 = vmatpush.msra.mxu1 %v113_v6  ;;  %v59_v17 = vld [vmem:[#allocation2 + $0x28] sm:$0xff]  ;;  %v107_v18 = vld [vmem:[#allocation4 + $0x40] sm:$0xff]  ;;  %v106_v20 = vld [vmem:[#allocation4 + $0x38] sm:$0xff] }
  0x12   :  { %153 = vmatpush.msra.mxu2 %v66_v3  ;;  %77 = vmatpush.msra.mxu0 %v66_v3  ;;  %v58_v19 = vld [vmem:[#allocation2 + $0x20] sm:$0xff]  ;;  %v57_v21 = vld [vmem:[#allocation2 + $0x18] sm:$0xff]  ;;  %v105_v22 = vld [vmem:[#allocation4 + $0x30] sm:$0xff] }
  0x13   :  { %168 = vmatpush.msra.mxu3 %v112_v8  ;;  %121 = vmatpush.msra.mxu1 %v112_v8  ;;  %v56_v23 = vld [vmem:[#allocation2 + $0x10] sm:$0xff]  ;;  %v104_v24 = vld [vmem:[#allocation4 + $0x28] sm:$0xff]  ;;  %v103_v26 = vld [vmem:[#allocation4 + $0x20] sm:$0xff] }
  0x14   :  { %154 = vmatpush.msra.mxu2 %v65_v4  ;;  %78 = vmatpush.msra.mxu0 %v65_v4  ;;  %v55_v25 = vld [vmem:[#allocation2 + $0x8] sm:$0xff]  ;;  %v54_v27 = vld [vmem:[#allocation2] sm:$0xff]  ;;  %v102_v30 = vld [vmem:[#allocation4 + $0x18] sm:$0xff] }
  0x15   :  { %169 = vmatpush.msra.mxu3 %v111_v10  ;;  %122 = vmatpush.msra.mxu1 %v111_v10  ;;  %v53_v28 = vld [vmem:[%s298_s0 + $0x8] sm:$0xff]  ;;  %v52_v29 = vld [vmem:[%s298_s0] sm:$0xff]  ;;  %v101_v31 = vld [vmem:[#allocation4 + $0x10] sm:$0xff] }
  0x16   :  { %155 = vmatpush.msra.mxu2 %v64_v7  ;;  %79 = vmatpush.msra.mxu0 %v64_v7  ;;  %v100_v32 = vld [vmem:[#allocation4 + $0x8] sm:$0xff]  ;;  %v99_v33 = vld [vmem:[#allocation4] sm:$0xff] }
  0x17   :  { %170 = vmatpush.msra.mxu3 %v110_v12  ;;  %123 = vmatpush.msra.mxu1 %v110_v12  ;;  %v186_v34 = vld [vmem:[%s300_s2] ss:$0 sm:$0xff] }
  0x18   :  { %156 = vmatpush.msra.mxu2 %v63_v9  ;;  %80 = vmatpush.msra.mxu0 %v63_v9  ;;  %v187_v41 = vld [vmem:[%s302_s4] ss:$0 sm:$0xff] }
  0x19   :  { %171 = vmatpush.msra.mxu3 %v109_v14  ;;  %124 = vmatpush.msra.mxu1 %v109_v14 }
  0x1a   :  { %157 = vmatpush.msra.mxu2 %v62_v11  ;;  %81 = vmatpush.msra.mxu0 %v62_v11 }
  0x1b   :  { %172 = vmatpush.msra.mxu3 %v108_v16  ;;  %125 = vmatpush.msra.mxu1 %v108_v16 }
  0x1c   :  { %158 = vmatpush.msra.mxu2 %v61_v13  ;;  %82 = vmatpush.msra.mxu0 %v61_v13 }
  0x1d   :  { %173 = vmatpush.msra.mxu3 %v107_v18  ;;  %126 = vmatpush.msra.mxu1 %v107_v18 }
  0x1e   :  { %159 = vmatpush.msra.mxu2 %v60_v15  ;;  %83 = vmatpush.msra.mxu0 %v60_v15 }
  0x1f   :  { %174 = vmatpush.msra.mxu3 %v106_v20  ;;  %127 = vmatpush.msra.mxu1 %v106_v20 }
  0x20   :  { %160 = vmatpush.msra.mxu2 %v59_v17  ;;  %84 = vmatpush.msra.mxu0 %v59_v17 }
  0x21   :  { %175 = vmatpush.msra.mxu3 %v105_v22  ;;  %128 = vmatpush.msra.mxu1 %v105_v22 }
  0x22   :  { %161 = vmatpush.msra.mxu2 %v58_v19  ;;  %85 = vmatpush.msra.mxu0 %v58_v19 }
  0x23   :  { %176 = vmatpush.msra.mxu3 %v104_v24  ;;  %129 = vmatpush.msra.mxu1 %v104_v24 }
  0x24   :  { %162 = vmatpush.msra.mxu2 %v57_v21  ;;  %86 = vmatpush.msra.mxu0 %v57_v21 }
  0x25   :  { %177 = vmatpush.msra.mxu3 %v103_v26  ;;  %130 = vmatpush.msra.mxu1 %v103_v26 }
  0x26   :  { %163 = vmatpush.msra.mxu2 %v56_v23  ;;  %87 = vmatpush.msra.mxu0 %v56_v23 }
  0x27   :  { %178 = vmatpush.msra.mxu3 %v102_v30  ;;  %131 = vmatpush.msra.mxu1 %v102_v30 }
  0x28   :  { %164 = vmatpush.msra.mxu2 %v55_v25  ;;  %88 = vmatpush.msra.mxu0 %v55_v25 }
  0x29   :  { %179 = vmatpush.msra.mxu3 %v101_v31  ;;  %132 = vmatpush.msra.mxu1 %v101_v31 }
  0x2a   :  { %165 = vmatpush.msra.mxu2 %v54_v27  ;;  %89 = vmatpush.msra.mxu0 %v54_v27 }
  0x2b   :  { %93 = vmatmul.f32.vlgmr.msra.gmra.mxu2 %v53_v28  ;;  %90 = vmatmul.f32.vlgmr.msra.gmra.mxu0 %v52_v29 }
  0x2c   :  { %180 = vmatpush.msra.mxu3 %v100_v32  ;;  %133 = vmatpush.msra.mxu1 %v100_v32 }
  0x2e   :  { %181 = vmatpush.msra.mxu3 %v99_v33  ;;  %134 = vmatpush.msra.mxu1 %v99_v33 }
  0xa8   :  { %v91_v35 = vpop.f32.mrf.mxu0 }
  0xa9   :  { %v92_v36 = vadd.f32 %v186_v34, %v91_v35 }
  0xab   :  { %v97_v37 = vmax.f32 %v92_v36, 0.0 }
  0xad   :  { %135 = vmatmul.f32.vlgmr.msra.gmra.mxu1 %v97_v37 }
  0xae   :  { %v94_v38 = vpop.f32.mrf.mxu2 }
  0xaf   :  { %v95_v39 = vadd.f32 %v186_v34, %v94_v38 }
  0xb1   :  { %v98_v40 = vmax.f32 %v95_v39, 0.0 }
  0xb3   :  { %138 = vmatmul.f32.vlgmr.msra.gmra.mxu3 %v98_v40 }
 0x12a   :  { %v136_v42 = vpop.f32.mrf.mxu1 }
 0x12b   :  { %v137_v43 = vadd.f32 %v187_v41, %v136_v42 }
 0x12d   :  { %142 = vst [vmem:[%s303_s5] sm:$0xff] %v137_v43 }
 0x136   :  { %v139_v44 = vpop.f32.mrf.mxu3 }
 0x137   :  { %v140_v45 = vadd.f32 %v187_v41, %v139_v44 }
 0x139   :  { %143 = vst [vmem:[%s303_s5 + $0x8] sm:$0xff] %v140_v45 }
 0x13a   :  { %148 = vsyncpa [#allocation3], 1 }
 0x13b   :  { %149 = vsyncpa [#allocation5], 1 }

</bundles_post_ra>
